<compile_context>
chip_gen: v6e
topology: v6e:2x2x1
jax: 0.10.0
libtpu: 0.0.40
codegen_flags: <defaults>
</compile_context>

<pallas_src>
import functools

import jax
import jax.numpy as jnp
from jax import lax
from jax.experimental import pallas as pl
from jax.experimental.pallas import tpu as pltpu


# --------------------------- Pallas kernel ----------------------------------
def upconv_kernel(x_ref, w_ref, b_ref, o_ref, *, th, w_dim, cout):
    # x_ref: (th*W, Cin)   w_ref: (Cin, 4*Cout)   b_ref: (1, 4*Cout)
    # o_ref: (th, 2, W, 2*Cout) laid out as [h, dy, w, dx*Cout + c]
    acc = jnp.dot(x_ref[...], w_ref[...], preferred_element_type=jnp.float32)
    acc = (acc + b_ref[...]).astype(o_ref.dtype)              # (th*W, 4*Cout)
    two_c = 2 * cout
    # acc columns are packed (dy, dx, c); peel dy into the output's row dim.
    # (th*W, 2C) -> (th, W, 2C) only regroups rows (layout no-op for W % 8 == 0).
    o_ref[:, 0, :, :] = acc[:, :two_c].reshape(th, w_dim, two_c)  # even out rows
    o_ref[:, 1, :, :] = acc[:, two_c:].reshape(th, w_dim, two_c)  # odd  out rows


def _pick_tile_h(nh, w, cin, cout, in_bytes, out_bytes, budget_bytes=16 << 20):
    """Rows of H per grid step.  Budget covers the double-buffered x/out tiles
    plus the (double-buffered) VMEM-resident packed weight & bias; keeps >=4
    grid steps when there is enough work (2 tiles per TensorCore on v7x)."""
    fixed = 2 * (cin * 4 * cout * in_bytes + 4 * cout * 4)
    per_row = 2 * (w * cin * in_bytes + 4 * w * cout * out_bytes)
    th = max((budget_bytes - fixed) // max(per_row, 1), 1)
    th = min(th, nh)
    if nh >= 32:
        th = min(th, pl.cdiv(nh, 4))
    elif nh >= 16:
        th = min(th, pl.cdiv(nh, 2))
    if th < nh:
        th = max(8, (th // 8) * 8)
    return int(th)


# ------------------------------ wrapper --------------------------------------
def up_forward(x_nchw, weight, bias, *, compute_dtype=jnp.bfloat16,
               channels_last=False):
    """ConvTranspose2d(Cin, Cout, 2, stride=2) forward.

    x_nchw : (N, Cin, H, W)
    weight : (Cin, Cout, 2, 2)   -- PyTorch ConvTranspose2d layout
    bias   : (Cout,)
    returns: (N, Cout, 2H, 2W)   (or (N, 2H, 2W, Cout) if channels_last=True)
    """
    N, Cin, H, W = x_nchw.shape
    Cin_w, Cout, KH, KW = weight.shape
    assert Cin_w == Cin and (KH, KW) == (2, 2)
    out_dtype = x_nchw.dtype
    four_c, two_c = 4 * Cout, 2 * Cout
    NH = N * H

    # NCHW -> (N*H*W, Cin) channel rows, fused with the compute-dtype cast.
    x_rows = jnp.transpose(x_nchw, (0, 2, 3, 1)).reshape(NH * W, Cin)
    x_rows = x_rows.astype(compute_dtype)

    # 2x2 kernel packed into lanes: col = (dy*2 + dx)*Cout + c.
    w_packed = jnp.transpose(weight, (0, 2, 3, 1)).reshape(Cin, four_c)
    w_packed = w_packed.astype(compute_dtype)
    b_packed = jnp.tile(bias.astype(jnp.float32), 4).reshape(1, four_c)

    th = _pick_tile_h(NH, W, Cin, Cout,
                      jnp.dtype(compute_dtype).itemsize,
                      jnp.dtype(out_dtype).itemsize)
    grid = (pl.cdiv(NH, th),)

    kernel = functools.partial(upconv_kernel, th=th, w_dim=W, cout=Cout)
    y = pl.pallas_call(
        kernel,
        out_shape=jax.ShapeDtypeStruct((NH, 2, W, two_c), out_dtype),
        grid=grid,
        in_specs=[
            pl.BlockSpec((th * W, Cin), lambda i: (i, 0)),
            pl.BlockSpec((Cin, four_c), lambda i: (0, 0)),   # VMEM-resident
            pl.BlockSpec((1, four_c), lambda i: (0, 0)),     # VMEM-resident
        ],
        out_specs=pl.BlockSpec((th, 2, W, two_c), lambda i: (i, 0, 0, 0)),
        compiler_params=pltpu.CompilerParams(
            dimension_semantics=("parallel",),
            vmem_limit_bytes=32 * 1024 * 1024),
    )(x_rows, w_packed, b_packed)

    # (N*H, 2, W, 2*Cout) is already NHWC row-major: this reshape is free.
    out_nhwc = y.reshape(N, 2 * H, 2 * W, Cout)
    if channels_last:
        return out_nhwc
    # Single plain 4-D layout change back to the module's NCHW output.
    return jnp.transpose(out_nhwc, (0, 3, 1, 2))

    # TODO(synk): the bilinear=True branch of `up` (nn.Upsample bilinear,
    # align_corners=True) is not the default path and is not implemented here.


# --------------- pure-JAX reference (independent code path) ------------------
def up_ref(x_nchw, weight, bias):
    # Transposed conv as a fractionally-strided conv: dilate input by 2,
    # pad by k-1=1, correlate with the flipped kernel.
    w_conv = jnp.flip(jnp.transpose(weight, (1, 0, 2, 3)), axis=(2, 3))  # OIHW
    y = lax.conv_general_dilated(
        x_nchw, w_conv,
        window_strides=(1, 1),
        padding=((1, 1), (1, 1)),
        lhs_dilation=(2, 2),
        dimension_numbers=("NCHW", "OIHW", "NCHW"),
        precision=lax.Precision.HIGHEST)
    return y + bias.reshape(1, -1, 1, 1)


if __name__ == "__main__":
    N, Cin, H, W = 2, 4, 16, 16
    Cout = Cin  # ConvTranspose2d(in_ch, in_ch, 2, stride=2)

    key = jax.random.PRNGKey(0)
    kx, kw, kb = jax.random.split(key, 3)

    x = jax.random.normal(kx, (N, Cin, H, W), jnp.float32)
    # PyTorch-like uniform init bounds for ConvTranspose2d.
    bound = 1.0 / (Cin * 2 * 2) ** 0.5
    weight = jax.random.uniform(kw, (Cin, Cout, 2, 2), jnp.float32, -bound, bound)
    bias = jax.random.uniform(kb, (Cout,), jnp.float32, -bound, bound)

    ref = up_ref(x, weight, bias)

    # Exact-arithmetic path: proves the weight packing / dy,dx peel / layout.
    out_f32 = jax.jit(functools.partial(up_forward, compute_dtype=jnp.float32))(
        x, weight, bias)
    jax.block_until_ready(out_f32)
    assert out_f32.shape == (N, Cout, 2 * H, 2 * W), out_f32.shape
    err32 = float(jnp.max(jnp.abs(out_f32 - ref)))
    assert jnp.allclose(out_f32, ref, rtol=1e-4, atol=1e-4), f"f32 max_err={err32}"

    # Default fast path: bf16 operands, f32 accumulation (bandwidth-bound op).
    out_bf16 = jax.jit(up_forward)(x, weight, bias)
    jax.block_until_ready(out_bf16)
    assert out_bf16.shape == (N, Cout, 2 * H, 2 * W), out_bf16.shape
    assert out_bf16.dtype == x.dtype
    errbf = float(jnp.max(jnp.abs(out_bf16 - ref)))
    assert jnp.allclose(out_bf16, ref, rtol=3e-2, atol=3e-2), f"bf16 max_err={errbf}"

    print("KERNEL_OK")
</pallas_src>

<mosaic_0001>
module attributes {stable_mosaic.version = 11 : i64} {
  func.func @upconv_kernel(%arg0: i32, %arg1: memref<128x4xf32, #tpu.memory_space<vmem>>, %arg2: memref<4x16xf32, #tpu.memory_space<vmem>>, %arg3: memref<1x16xf32, #tpu.memory_space<vmem>>, %arg4: memref<8x2x16x8xf32, #tpu.memory_space<vmem>>) attributes {dimension_semantics = [#tpu.dimension_semantics<parallel>], iteration_bounds = array<i64: 4>, scalar_prefetch = 0 : i64, scratch_operands = 0 : i64, tpu.core_type = #tpu.core_type<tc>, window_params = [{transform_indices = @transform_0, window_bounds = array<i64: 128, 4>}, {pipeline_mode = #tpu.pipeline_mode<synchronous>, transform_indices = @transform_1, window_bounds = array<i64: 4, 16>}, {pipeline_mode = #tpu.pipeline_mode<synchronous>, transform_indices = @transform_2, window_bounds = array<i64: 1, 16>}, {transform_indices = @transform_3, window_bounds = array<i64: 8, 2, 16, 8>}]} {
    %c0 = arith.constant 0 : index
    %c0_0 = arith.constant 0 : index
    %0 = vector.load %arg1[%c0, %c0_0] : memref<128x4xf32, #tpu.memory_space<vmem>>, vector<128x4xf32>
    %c0_1 = arith.constant 0 : index
    %c0_2 = arith.constant 0 : index
    %1 = vector.load %arg2[%c0_1, %c0_2] : memref<4x16xf32, #tpu.memory_space<vmem>>, vector<4x16xf32>
    %cst = arith.constant dense<0.000000e+00> : vector<128x16xf32>
    %2 = tpu.matmul %0, %1, %cst {dimension_numbers = #tpu.dot_dimension_numbers<[1], [0], [0], [1], [0, 0, 1, 1], [], []>} : vector<128x4xf32>, vector<4x16xf32>, vector<128x16xf32> -> vector<128x16xf32>
    %c0_3 = arith.constant 0 : index
    %c0_4 = arith.constant 0 : index
    %3 = vector.load %arg3[%c0_3, %c0_4] : memref<1x16xf32, #tpu.memory_space<vmem>>, vector<1x16xf32>
    %4 = vector.broadcast %3 : vector<1x16xf32> to vector<128x16xf32>
    %5 = arith.addf %2, %4 : vector<128x16xf32>
    %6 = vector.extract_strided_slice %5 {offsets = [0, 0], sizes = [128, 8], strides = [1, 1]} : vector<128x16xf32> to vector<128x8xf32>
    %7 = vector.shape_cast %6 : vector<128x8xf32> to vector<8x16x8xf32>
    %c0_5 = arith.constant 0 : index
    %c0_6 = arith.constant 0 : index
    %c0_7 = arith.constant 0 : index
    %c0_8 = arith.constant 0 : index
    %8 = vector.load %arg4[%c0_5, %c0_6, %c0_7, %c0_8] : memref<8x2x16x8xf32, #tpu.memory_space<vmem>>, vector<8x1x16x8xf32>
    %9 = vector.shape_cast %8 : vector<8x1x16x8xf32> to vector<8x16x8xf32>
    %10 = vector.shape_cast %7 : vector<8x16x8xf32> to vector<8x1x16x8xf32>
    tpu.vector_store %arg4[%c0_5, %c0_6, %c0_7, %c0_8], %10 {strides = array<i32>} : memref<8x2x16x8xf32, #tpu.memory_space<vmem>>, vector<8x1x16x8xf32>,
    %11 = vector.extract_strided_slice %5 {offsets = [0, 8], sizes = [128, 8], strides = [1, 1]} : vector<128x16xf32> to vector<128x8xf32>
    %12 = vector.shape_cast %11 : vector<128x8xf32> to vector<8x16x8xf32>
    %c0_9 = arith.constant 0 : index
    %c1 = arith.constant 1 : index
    %c0_10 = arith.constant 0 : index
    %c0_11 = arith.constant 0 : index
    %13 = vector.load %arg4[%c0_9, %c1, %c0_10, %c0_11] : memref<8x2x16x8xf32, #tpu.memory_space<vmem>>, vector<8x1x16x8xf32>
    %14 = vector.shape_cast %13 : vector<8x1x16x8xf32> to vector<8x16x8xf32>
    %15 = vector.shape_cast %12 : vector<8x16x8xf32> to vector<8x1x16x8xf32>
    tpu.vector_store %arg4[%c0_9, %c1, %c0_10, %c0_11], %15 {strides = array<i32>} : memref<8x2x16x8xf32, #tpu.memory_space<vmem>>, vector<8x1x16x8xf32>,
    return
  }
  func.func @transform_0(%arg0: i32) -> (i32, i32) {
    %c0_i32 = arith.constant 0 : i32
    %c0_i32_0 = arith.constant 0 : i32
    return %arg0, %c0_i32 : i32, i32
  }
  func.func @transform_1(%arg0: i32) -> (i32, i32) {
    %c0_i32 = arith.constant 0 : i32
    %c0_i32_0 = arith.constant 0 : i32
    %c0_i32_1 = arith.constant 0 : i32
    return %c0_i32, %c0_i32_0 : i32, i32
  }
  func.func @transform_2(%arg0: i32) -> (i32, i32) {
    %c0_i32 = arith.constant 0 : i32
    %c0_i32_0 = arith.constant 0 : i32
    %c0_i32_1 = arith.constant 0 : i32
    return %c0_i32, %c0_i32_0 : i32, i32
  }
  func.func @transform_3(%arg0: i32) -> (i32, i32, i32, i32) {
    %c0_i32 = arith.constant 0 : i32
    %c0_i32_0 = arith.constant 0 : i32
    %c0_i32_1 = arith.constant 0 : i32
    %c0_i32_2 = arith.constant 0 : i32
    return %arg0, %c0_i32, %c0_i32_0, %c0_i32_1 : i32, i32, i32, i32
  }
}

</mosaic_0001>

<bundles_post_ra>
// kernel: tile.9
= control target key start
LH: loop header
LB: loop body
LE: loop exit
PB: predicated region body
PF: predicated region fallthrough
CT: control target
= control target key end

     0   :  { %vm8_vm0 = vcmask 31744   ;;  %s40_s8 = smov 4   ;;  %s41_s9 = smov 8   ;;  %vm14_vm1 = vcmask 130144   ;;  %vm20_vm2 = vcmask 97344   ;;  %vm26_vm3 = vcmask 64544   ;;  %s58_s0 = inlined_call_operand.vmem [shape: f32[4,4], index: 0, kind: input, shape index: {}]   ;;  %s59_s1 = inlined_call_operand.vmem [shape: f32[1,16], index: 1, kind: output, shape index: {}]  }
   0x1   :  { %v5_v0 = vld [vmem:[%s58_s0] sm:$0xf]  ;;  %s39_s0 = smov 12  }
   0x2   :  { %6 = vst [vmem:[#allocation1] sm:$0xf] %v5_v0 }
   0x9   :  { %v11_v1 = vld [vmem:[#allocation1 + $0x3] sm:$0x1]   ;;  %v23_v2 = vld [vmem:[#allocation1 + $0x1] sm:$0x1]   ;;  %v7_v3 = vld [vmem:[#allocation1] sm:$0x1]  }
   0xa   :  { %12 = vrot.lane.b32.xlu0 %v11_v1, %s39_s0  ;;  %24 = vrot.lane.b32.xlu1 %v23_v2, %s40_s8  ;;  %v17_v4 = vld [vmem:[#allocation1 + $0x2] sm:$0x1]   ;;  %9 = vst.msk [vmem:[#allocation0] sm:$0x1] %vm8_vm0, %v7_v3  }
   0xe   :  { %18 = vrot.lane.b32.xlu0 %v17_v4, %s41_s9 }
  0x7c   :  { %v13_v5 = vpop.permute.xlu0 %12   ;;  %v25_v6 = vpop.permute.xlu1 %24  }
  0x7d   :  { %15 = vst.msk [vmem:[#allocation0] sm:$0x1] %vm14_vm1, %v13_v5  }
  0x80   :  { %v19_v7 = vpop.permute.xlu0 %18  }
  0x81   :  { %21 = vst.msk [vmem:[#allocation0] sm:$0x1] %vm20_vm2, %v19_v7  }
  0x82   :  { %27 = vst.msk [vmem:[#allocation0] sm:$0x1] %vm26_vm3, %v25_v6  }
  0x89   :  { %v32_v8 = vld [vmem:[#allocation0] sm:$0x1] }
  0x8a   :  { %35 = vst [vmem:[%s59_s1] sm:$0x1] %v32_v8 }

// kernel: tile.8
= control target key start
LH: loop header
LB: loop body
LE: loop exit
PB: predicated region body
PF: predicated region fallthrough
CT: control target
= control target key end

     0   :  { %s22_s0 = inlined_call_operand.vmem [shape: f32[4], index: 0, kind: input, shape index: {}]   ;;  %s23_s1 = inlined_call_operand.vmem [shape: f32[4,4], index: 1, kind: output, shape index: {}]  }
   0x1   :  { %v4_v0 = vld [vmem:[%s22_s0] ss:$0 sm:$0xff] }
   0x2   :  { %5 = vst [vmem:[%s23_s1] sm:$0xf] %v4_v0 }

// kernel: up_forward.1
= control target key start
LH: loop header
LB: loop body
LE: loop exit
PB: predicated region body
PF: predicated region fallthrough
CT: control target
= control target key end

     0   :  { %s684_s12 = smov 0   ;;  %s809_s0 = inlined_call_operand.vmem [shape: f32[512,4], index: 0, kind: input, shape index: {}]   ;;  %s810_s1 = inlined_call_operand.vmem [shape: f32[4,16], index: 1, kind: input, shape index: {}]   ;;  %s811_s2 = inlined_call_operand.vmem [shape: f32[1,16], index: 2, kind: input, shape index: {}]   ;;  %s812_s3 = inlined_call_operand.vmem [shape: f32[32,2,16,8], index: 3, kind: output, shape index: {}]  }
   0x1 LB: > { %s554_s13 = sadd.s32 4294967295, %s661_s12   ;;  %p558_p0 = scmp.ge.s32.totalorder %s661_s12, 1  ;;  %s661_s12 = sphi %s684_s12, %s13_s12  }
   0x2   : > { %p138_p1 = scmp.lt.s32.totalorder %s661_s12, 5 }
   0x4   : > { %p139_p2 = pnand %p558_p0, %p138_p1 }
   0x5   : > { %s559_s16 = sshll.u32 (!%p139_p2), %s554_s13, 4  ;;  %s561_s21 = sshll.u32 (!%p139_p2), %s554_s13, 3 }
   0x6   : > { %142 = sbr.rel (%p139_p2) target bundleno = 356 (0x164), region = 32  ;;  %p164_p3 = scmp.lt.s32.totalorder (!%p139_p2), %s559_s16, 63 }
   0x7   : > { %p170_p4 = scmp.lt.s32.totalorder (!%p139_p2), %s561_s21, 31  ;;  %s663_s28 = smov (!%p139_p2), 120  }
   0xb   : > { %v192_v0 = vld [vmem:[%s810_s1] sm:$0xf]  ;;  %vm249_vm0 = vcmask 1043456   ;;  %s814_s16 = smov (!%p164_p3, %s559_s16), 63  ;;  %vm200_vm1 = vcmask 31744   ;;  %s816_s21 = smov (!%p170_p4, %s561_s21), 31 }
   0xc   : > { %618 = vmatprep.subr.msk.mxu0 %vm249_vm0, %v192_v0  ;;  %644 = vmatprep.subr.msk.mxu1 %vm249_vm0, %v192_v0  ;;  %s560_s17 = sshll.u32 %s814_s16, 3  ;;  %s600_s22 = sshll.u32 %s816_s21, 5  ;;  %v564_v17 = vld [vmem:[%s811_s2] ss:$0 sm:$0xff]  ;;  %vm398_vm2 = vcmask 64512  }
   0xd   : > { %619 = vmatpush3.msk.msra.mxu0 %vm249_vm0, %v192_v0  ;;  %645 = vmatpush3.msk.msra.mxu1 %vm249_vm0, %v192_v0  ;;  %s167_s20 = scalar_lea.vmem %s809_s0, %s560_s17  ;;  %s724_s27 = scalar_lea.vmem %s812_s3, %s600_s22 }
   0xe   : > { %v176_v1 = vld [vmem:[%s167_s20] sm:$0xff]  ;;  %v177_v3 = vld [vmem:[%s167_s20 + $0x8] sm:$0xff]  ;;  %v178_v5 = vld [vmem:[%s167_s20 + $0x10] sm:$0xff] }
   0xf   : > { %v184_v2 = vld [vmem:[%s167_s20 + $0x40] sm:$0xff]  ;;  %620 = vmatprep.mubr.msk.f32.mxu0 %vm200_vm1, %v176_v1  ;;  %v185_v4 = vld [vmem:[%s167_s20 + $0x48] sm:$0xff]  ;;  %v186_v6 = vld [vmem:[%s167_s20 + $0x50] sm:$0xff] }
  0x10   : > { %632 = vmatprep.mubr.msk.f32.mxu1 %vm200_vm1, %v184_v2  ;;  %621 = vmatmul.mubr.msk.f32.vlgmr.msra.gmra.mxu0 %vm200_vm1, %v177_v3  ;;  %v179_v7 = vld [vmem:[%s167_s20 + $0x18] sm:$0xff]  ;;  %v180_v9 = vld [vmem:[%s167_s20 + $0x20] sm:$0xff]  ;;  %v181_v11 = vld [vmem:[%s167_s20 + $0x28] sm:$0xff] }
  0x11   : > { %633 = vmatmul.mubr.msk.f32.vlgmr.msra.gmra.mxu1 %vm200_vm1, %v185_v4  ;;  %623 = vmatprep.mubr.msk.f32.mxu0 %vm200_vm1, %v178_v5  ;;  %v187_v8 = vld [vmem:[%s167_s20 + $0x58] sm:$0xff]  ;;  %v188_v10 = vld [vmem:[%s167_s20 + $0x60] sm:$0xff]  ;;  %v189_v12 = vld [vmem:[%s167_s20 + $0x68] sm:$0xff] }
  0x12   : > { %635 = vmatprep.mubr.msk.f32.mxu1 %vm200_vm1, %v186_v6  ;;  %v182_v13 = vld [vmem:[%s167_s20 + $0x30] sm:$0xff]  ;;  %v183_v15 = vld [vmem:[%s167_s20 + $0x38] sm:$0xff] }
  0x13   : > { %v190_v14 = vld [vmem:[%s167_s20 + $0x70] sm:$0xff]  ;;  %v191_v16 = vld [vmem:[%s167_s20 + $0x78] sm:$0xff] }
  0x14   : > { %624 = vmatmul.mubr.msk.f32.gmra.mxu0 %vm200_vm1, %v179_v7 }
  0x15   : > { %636 = vmatmul.mubr.msk.f32.gmra.mxu1 %vm200_vm1, %v187_v8  ;;  %626 = vmatprep.mubr.msk.f32.mxu0 %vm200_vm1, %v180_v9 }
  0x16   : > { %638 = vmatprep.mubr.msk.f32.mxu1 %vm200_vm1, %v188_v10 }
  0x18   : > { %627 = vmatmul.mubr.msk.f32.gmra.mxu0 %vm200_vm1, %v181_v11 }
  0x19   : > { %639 = vmatmul.mubr.msk.f32.gmra.mxu1 %vm200_vm1, %v189_v12  ;;  %629 = vmatprep.mubr.msk.f32.mxu0 %vm200_vm1, %v182_v13 }
  0x1a   : > { %641 = vmatprep.mubr.msk.f32.mxu1 %vm200_vm1, %v190_v14 }
  0x1c   : > { %630 = vmatmul.mubr.msk.f32.gmra.mxu0 %vm200_vm1, %v183_v15 }
  0x1d   : > { %642 = vmatmul.mubr.msk.f32.gmra.mxu1 %vm200_vm1, %v191_v16 }
  0xd0   : > { %v622_v18 = vpop.f32.mrf.mxu0 }
  0xd1   : > { %v634_v19 = vpop.f32.mrf.mxu1  ;;  %v325_v20 = vadd.f32 %v622_v18, %v564_v17 }
  0xd2   : > { %v365_v21 = vadd.f32 %v634_v19, %v564_v17  ;;  %v319_v22 = vpop.f32.mrf.mxu0 }
  0xd3   : > { %v359_v23 = vpop.f32.mrf.mxu1  ;;  %400 = vst.msk [vmem:[%s724_s27 + $0x8] sm:$0xff] %vm398_vm2, %v325_v20  ;;  %v320_v24 = vadd.f32 %v564_v17, %v319_v22  ;;  %433 = vrot.lane.b32.xlu0 %v325_v20, %s663_s28 }
  0xd4   : > { %408 = vst.msk [vmem:[%s724_s27 + $0x88] sm:$0xff] %vm398_vm2, %v365_v21  ;;  %v360_v25 = vadd.f32 %v564_v17, %v359_v23  ;;  %449 = vrot.lane.b32.xlu1 %v365_v21, %s663_s28  ;;  %v625_v26 = vpop.f32.mrf.mxu0 }
  0xd5   : > { %v637_v27 = vpop.f32.mrf.mxu1  ;;  %399 = vst.msk [vmem:[%s724_s27] sm:$0xff] %vm398_vm2, %v320_v24  ;;  %v335_v28 = vadd.f32 %v625_v26, %v564_v17 }
  0xd6   : > { %407 = vst.msk [vmem:[%s724_s27 + $0x80] sm:$0xff] %vm398_vm2, %v360_v25  ;;  %v375_v29 = vadd.f32 %v637_v27, %v564_v17  ;;  %v329_v30 = vpop.f32.mrf.mxu0 }
  0xd7   : > { %v369_v31 = vpop.f32.mrf.mxu1  ;;  %402 = vst.msk [vmem:[%s724_s27 + $0x28] sm:$0xff] %vm398_vm2, %v335_v28  ;;  %v330_v32 = vadd.f32 %v564_v17, %v329_v30  ;;  %431 = vrot.lane.b32.xlu0 %v320_v24, %s663_s28 }
  0xd8   : > { %410 = vst.msk [vmem:[%s724_s27 + $0xa8] sm:$0xff] %vm398_vm2, %v375_v29  ;;  %437 = vrot.lane.b32.xlu1 %v335_v28, %s663_s28  ;;  %v370_v33 = vadd.f32 %v564_v17, %v369_v31  ;;  %v628_v34 = vpop.f32.mrf.mxu0 }
  0xd9   : > { %v640_v35 = vpop.f32.mrf.mxu1  ;;  %401 = vst.msk [vmem:[%s724_s27 + $0x20] sm:$0xff] %vm398_vm2, %v330_v32  ;;  %v345_v36 = vadd.f32 %v628_v34, %v564_v17 }
  0xda   : > { %409 = vst.msk [vmem:[%s724_s27 + $0xa0] sm:$0xff] %vm398_vm2, %v370_v33  ;;  %v385_v37 = vadd.f32 %v640_v35, %v564_v17  ;;  %v339_v38 = vpop.f32.mrf.mxu0 }
  0xdb   : > { %v379_v39 = vpop.f32.mrf.mxu1  ;;  %447 = vrot.lane.b32.xlu0 %v360_v25, %s663_s28  ;;  %404 = vst.msk [vmem:[%s724_s27 + $0x48] sm:$0xff] %vm398_vm2, %v345_v36  ;;  %v340_v40 = vadd.f32 %v564_v17, %v339_v38 }
  0xdc   : > { %453 = vrot.lane.b32.xlu1 %v375_v29, %s663_s28  ;;  %412 = vst.msk [vmem:[%s724_s27 + $0xc8] sm:$0xff] %vm398_vm2, %v385_v37  ;;  %v380_v41 = vadd.f32 %v564_v17, %v379_v39  ;;  %v631_v42 = vpop.f32.mrf.mxu0 }
  0xdd   : > { %v643_v43 = vpop.f32.mrf.mxu1  ;;  %403 = vst.msk [vmem:[%s724_s27 + $0x40] sm:$0xff] %vm398_vm2, %v340_v40  ;;  %v355_v44 = vadd.f32 %v631_v42, %v564_v17 }
  0xde   : > { %411 = vst.msk [vmem:[%s724_s27 + $0xc0] sm:$0xff] %vm398_vm2, %v380_v41  ;;  %v395_v45 = vadd.f32 %v643_v43, %v564_v17  ;;  %v349_v46 = vpop.f32.mrf.mxu0 }
  0xdf   : > { %v389_v47 = vpop.f32.mrf.mxu1  ;;  %451 = vrot.lane.b32.xlu0 %v370_v33, %s663_s28  ;;  %406 = vst.msk [vmem:[%s724_s27 + $0x68] sm:$0xff] %vm398_vm2, %v355_v44  ;;  %v350_v48 = vadd.f32 %v564_v17, %v349_v46 }
  0xe0   : > { %435 = vrot.lane.b32.xlu1 %v330_v32, %s663_s28  ;;  %414 = vst.msk [vmem:[%s724_s27 + $0xe8] sm:$0xff] %vm398_vm2, %v395_v45  ;;  %v390_v49 = vadd.f32 %v564_v17, %v389_v47 }
  0xe1   : > { %405 = vst.msk [vmem:[%s724_s27 + $0x60] sm:$0xff] %vm398_vm2, %v350_v48 }
  0xe2   : > { %413 = vst.msk [vmem:[%s724_s27 + $0xe0] sm:$0xff] %vm398_vm2, %v390_v49 }
  0xe3   : > { %439 = vrot.lane.b32.xlu0 %v340_v40, %s663_s28 }
  0xe4   : > { %441 = vrot.lane.b32.xlu1 %v345_v36, %s663_s28 }
  0xe7   : > { %455 = vrot.lane.b32.xlu0 %v380_v41, %s663_s28 }
  0xe8   : > { %457 = vrot.lane.b32.xlu1 %v385_v37, %s663_s28 }
  0xeb   : > { %443 = vrot.lane.b32.xlu0 %v350_v48, %s663_s28 }
  0xec   : > { %445 = vrot.lane.b32.xlu1 %v355_v44, %s663_s28 }
  0xef   : > { %459 = vrot.lane.b32.xlu0 %v390_v49, %s663_s28 }
  0xf0   : > { %461 = vrot.lane.b32.xlu1 %v395_v45, %s663_s28 }
 0x145   : > { %v434_v51 = vpop.permute.xlu0 %433 }
 0x146   : > { %v450_v50 = vpop.permute.xlu1 %449  ;;  %583 = vst.msk [vmem:[%s724_s27 + $0x18] sm:$0xff] %vm398_vm2, %v434_v51 }
 0x147   : > { %591 = vst.msk [vmem:[%s724_s27 + $0x98] sm:$0xff] %vm398_vm2, %v450_v50 }
 0x149   : > { %v432_v53 = vpop.permute.xlu0 %431 }
 0x14a   : > { %v438_v52 = vpop.permute.xlu1 %437  ;;  %582 = vst.msk [vmem:[%s724_s27 + $0x10] sm:$0xff] %vm398_vm2, %v432_v53 }
 0x14b   : > { %585 = vst.msk [vmem:[%s724_s27 + $0x38] sm:$0xff] %vm398_vm2, %v438_v52 }
 0x14d   : > { %v448_v55 = vpop.permute.xlu0 %447 }
 0x14e   : > { %v454_v54 = vpop.permute.xlu1 %453  ;;  %590 = vst.msk [vmem:[%s724_s27 + $0x90] sm:$0xff] %vm398_vm2, %v448_v55 }
 0x14f   : > { %593 = vst.msk [vmem:[%s724_s27 + $0xb8] sm:$0xff] %vm398_vm2, %v454_v54 }
 0x151   : > { %v452_v57 = vpop.permute.xlu0 %451 }
 0x152   : > { %v436_v56 = vpop.permute.xlu1 %435  ;;  %592 = vst.msk [vmem:[%s724_s27 + $0xb0] sm:$0xff] %vm398_vm2, %v452_v57 }
 0x153   : > { %584 = vst.msk [vmem:[%s724_s27 + $0x30] sm:$0xff] %vm398_vm2, %v436_v56 }
 0x155   : > { %v440_v59 = vpop.permute.xlu0 %439 }
 0x156   : > { %v442_v58 = vpop.permute.xlu1 %441  ;;  %586 = vst.msk [vmem:[%s724_s27 + $0x50] sm:$0xff] %vm398_vm2, %v440_v59 }
 0x157   : > { %587 = vst.msk [vmem:[%s724_s27 + $0x58] sm:$0xff] %vm398_vm2, %v442_v58 }
 0x159   : > { %v456_v61 = vpop.permute.xlu0 %455 }
 0x15a   : > { %v458_v60 = vpop.permute.xlu1 %457  ;;  %594 = vst.msk [vmem:[%s724_s27 + $0xd0] sm:$0xff] %vm398_vm2, %v456_v61 }
 0x15b   : > { %595 = vst.msk [vmem:[%s724_s27 + $0xd8] sm:$0xff] %vm398_vm2, %v458_v60 }
 0x15d   : > { %v444_v63 = vpop.permute.xlu0 %443 }
 0x15e   : > { %v446_v62 = vpop.permute.xlu1 %445  ;;  %588 = vst.msk [vmem:[%s724_s27 + $0x70] sm:$0xff] %vm398_vm2, %v444_v63 }
 0x15f   : > { %589 = vst.msk [vmem:[%s724_s27 + $0x78] sm:$0xff] %vm398_vm2, %v446_v62 }
 0x161   : > { %v460_v1 = vpop.permute.xlu0 %459 }
 0x162   : > { %v462_v0 = vpop.permute.xlu1 %461  ;;  %596 = vst.msk [vmem:[%s724_s27 + $0xf0] sm:$0xff] %vm398_vm2, %v460_v1 }
 0x163   : > { %597 = vst.msk [vmem:[%s724_s27 + $0xf8] sm:$0xff] %vm398_vm2, %v462_v0 }
 0x164 PF: > { %s13_s12 = sadd.s32 1, %s661_s12  }
 0x165   : > { %p10_p5 = scmp.ge.s32.totalorder %s13_s12, 6  }
 0x167   :  { %12 = sbr.rel (!%p10_p5) target bundleno = 1 (0x1), region = 63 }

</bundles_post_ra>
